<compile_context>
chip_gen: v7x
topology: tpu7x:2x2x1
jax: 0.10.0
libtpu: 0.0.40
codegen_flags: <defaults>
</compile_context>

<pallas_src>
import functools

import jax
import jax.numpy as jnp
from jax import lax
from jax.experimental import pallas as pl
from jax.experimental.pallas import tpu as pltpu


# ----------------------------- tiling helpers ------------------------------ #

def _pick_tile(dim, target, align):
    """Largest tile <= target that evenly divides `dim` and respects TPU layout
    alignment; falls back to the full dimension (always a legal block)."""
    if dim <= target:
        return dim
    t = (target // align) * align
    while t >= align:
        if dim % t == 0:
            return t
        t -= align
    return dim


# ------------------------- tiled linear (x @ W^T) -------------------------- #

def _linear_kernel(x_ref, w_ref, o_ref, acc_ref, *, n_k):
    # y = x @ W^T ; W is in torch layout (d_out, d_in); contract dim 1 vs dim 1
    # directly on the MXU (no host-side transpose of the weight).
    @pl.when(pl.program_id(2) == 0)
    def _():
        acc_ref[...] = jnp.zeros_like(acc_ref)

    acc_ref[...] += lax.dot_general(
        x_ref[...], w_ref[...], (((1,), (1,)), ((), ())),
        preferred_element_type=jnp.float32)

    @pl.when(pl.program_id(2) == n_k - 1)
    def _():
        o_ref[...] = acc_ref[...]


def pallas_linear(x, weight, tm=256, tn=256, tk=512):
    """x: (n, d_in) f32, weight: (d_out, d_in) torch layout. Returns (n, d_out)."""
    n, d_in = x.shape
    d_out = weight.shape[0]
    tm = _pick_tile(n, tm, 8)
    tn = _pick_tile(d_out, tn, 128)
    tk = _pick_tile(d_in, tk, 128)
    grid = (n // tm, d_out // tn, d_in // tk)
    kernel = functools.partial(_linear_kernel, n_k=grid[2])
    return pl.pallas_call(
        kernel,
        out_shape=jax.ShapeDtypeStruct((n, d_out), jnp.float32),
        grid=grid,
        in_specs=[pl.BlockSpec((tm, tk), lambda i, j, k: (i, k)),
                  pl.BlockSpec((tn, tk), lambda i, j, k: (j, k))],
        out_specs=pl.BlockSpec((tm, tn), lambda i, j, k: (i, j)),
        scratch_shapes=[pltpu.VMEM((tm, tn), jnp.float32)],
        compiler_params=pltpu.CompilerParams(
            dimension_semantics=("parallel", "parallel", "arbitrary")),
    )(x, weight)


# ------------------ fused relative attention (per batch) ------------------- #

def _fused_rel_attn_kernel(q_ref, k_ref, v_ref, rk_ref, rwb_ref, rrb_ref,
                           bias_ref, o_ref, *, n_head, d_head, scale,
                           qlen, klen):
    q = q_ref[0]            # (qlen, H*dh)   lane-dense
    k = k_ref[0]            # (klen, H*dh)
    v = v_ref[0]            # (klen, H*dh)
    rk = rk_ref[...]        # (klen, H*dh)
    bias = bias_ref[...]    # (qlen, klen) additive mask (0 / -1e30)

    # r_w_bias / r_r_bias adds hoisted out of the per-head loop.
    q_rw = q + rwb_ref[...]
    q_rr = q + rrb_ref[...]

    dn = (((1,), (1,)), ((), ()))            # x @ y^T (contract feature dim)
    zpad = jnp.zeros((qlen, qlen), jnp.float32)

    outs = []
    for h in range(n_head):
        sl = slice(h * d_head, (h + 1) * d_head)
        ac = lax.dot_general(q_rw[:, sl], k[:, sl], dn,
                             preferred_element_type=jnp.float32)       # (q, k)
        bd = lax.dot_general(q_rr[:, sl], rk[:, sl], dn,
                             preferred_element_type=jnp.float32)       # (q, k)

        # In-register _rel_shift: shifted[i, j] = bd[i, j + qlen - 1 - i]
        # (out-of-range entries are 0; they are exactly the masked positions,
        #  so the final output matches the torch pad/reshape semantics).
        if qlen > 1:
            bd_pad = jnp.concatenate([bd, zpad], axis=1)   # (qlen, klen+qlen)
            rows = [bd_pad[i:i + 1, qlen - 1 - i: qlen - 1 - i + klen]
                    for i in range(qlen)]
            bd = jnp.concatenate(rows, axis=0)

        score = (ac + bd) * scale + bias
        m = jnp.max(score, axis=-1, keepdims=True)
        p = jnp.exp(score - m)
        denom = jnp.sum(p, axis=-1, keepdims=True)
        prob = p * pl.reciprocal(denom, approx=True)        # EUP, not VALU div
        outs.append(jnp.dot(prob, v[:, sl],
                            preferred_element_type=jnp.float32))        # (q, dh)

    # Single lane-dense store of all heads.
    o_ref[0] = jnp.concatenate(outs, axis=-1)               # (qlen, H*dh)


def pallas_rel_attention(q_b, k_b, v_b, rk, rwb, rrb, mask_bias, n_head, scale):
    B, qlen, d_model = q_b.shape
    klen = k_b.shape[1]
    d_head = d_model // n_head
    kernel = functools.partial(_fused_rel_attn_kernel, n_head=n_head,
                               d_head=d_head, scale=scale, qlen=qlen, klen=klen)
    return pl.pallas_call(
        kernel,
        out_shape=jax.ShapeDtypeStruct((B, qlen, d_model), jnp.float32),
        grid=(B,),
        in_specs=[pl.BlockSpec((1, qlen, d_model), lambda b: (b, 0, 0)),
                  pl.BlockSpec((1, klen, d_model), lambda b: (b, 0, 0)),
                  pl.BlockSpec((1, klen, d_model), lambda b: (b, 0, 0)),
                  pl.BlockSpec((klen, d_model), lambda b: (0, 0)),
                  pl.BlockSpec((1, d_model), lambda b: (0, 0)),
                  pl.BlockSpec((1, d_model), lambda b: (0, 0)),
                  pl.BlockSpec((qlen, klen), lambda b: (0, 0))],
        out_specs=pl.BlockSpec((1, qlen, d_model), lambda b: (b, 0, 0)),
        compiler_params=pltpu.CompilerParams(
            dimension_semantics=("parallel",)),
    )(q_b, k_b, v_b, rk, rwb, rrb, mask_bias)


# --------------- fused output projection + residual + LayerNorm ------------ #

def _oproj_res_ln_kernel(x_ref, w_ref, res_ref, g_ref, b_ref, o_ref, *,
                         eps, post_lnorm):
    y = lax.dot_general(x_ref[...], w_ref[...], (((1,), (1,)), ((), ())),
                        preferred_element_type=jnp.float32)
    y = y + res_ref[...]
    if post_lnorm:
        mu = jnp.mean(y, axis=-1, keepdims=True)
        var = jnp.mean((y - mu) ** 2, axis=-1, keepdims=True)   # biased (torch)
        y = (y - mu) * lax.rsqrt(var + eps) * g_ref[...] + b_ref[...]
    o_ref[...] = y


def pallas_oproj_residual_ln(attn_vec, w_o, residual, gamma, beta,
                             post_lnorm=True, eps=1e-5, tm=256):
    n, d_in = attn_vec.shape                 # d_in = n_head * d_head
    d_model = w_o.shape[0]
    tm = _pick_tile(n, tm, 8)
    kernel = functools.partial(_oproj_res_ln_kernel, eps=eps,
                               post_lnorm=post_lnorm)
    return pl.pallas_call(
        kernel,
        out_shape=jax.ShapeDtypeStruct((n, d_model), jnp.float32),
        grid=(n // tm,),
        in_specs=[pl.BlockSpec((tm, d_in), lambda i: (i, 0)),
                  pl.BlockSpec((d_model, d_in), lambda i: (0, 0)),
                  pl.BlockSpec((tm, d_model), lambda i: (i, 0)),
                  pl.BlockSpec((1, d_model), lambda i: (0, 0)),
                  pl.BlockSpec((1, d_model), lambda i: (0, 0))],
        out_specs=pl.BlockSpec((tm, d_model), lambda i: (i, 0)),
        compiler_params=pltpu.CompilerParams(
            dimension_semantics=("parallel",)),
    )(attn_vec, w_o, residual, gamma.reshape(1, d_model),
      beta.reshape(1, d_model))


# ----------------------- standalone LayerNorm (pre-LN) --------------------- #

def _layernorm_kernel(x_ref, g_ref, b_ref, o_ref, *, eps):
    x = x_ref[...]
    mu = jnp.mean(x, axis=-1, keepdims=True)
    var = jnp.mean((x - mu) ** 2, axis=-1, keepdims=True)
    o_ref[...] = (x - mu) * lax.rsqrt(var + eps) * g_ref[...] + b_ref[...]


def pallas_layernorm(x, gamma, beta, eps=1e-5, tm=256):
    n, d = x.shape
    tm = _pick_tile(n, tm, 8)
    return pl.pallas_call(
        functools.partial(_layernorm_kernel, eps=eps),
        out_shape=jax.ShapeDtypeStruct((n, d), jnp.float32),
        grid=(n // tm,),
        in_specs=[pl.BlockSpec((tm, d), lambda i: (i, 0)),
                  pl.BlockSpec((1, d), lambda i: (0, 0)),
                  pl.BlockSpec((1, d), lambda i: (0, 0))],
        out_specs=pl.BlockSpec((tm, d), lambda i: (i, 0)),
        compiler_params=pltpu.CompilerParams(
            dimension_semantics=("parallel",)),
    )(x, gamma.reshape(1, d), beta.reshape(1, d))


# ------------------------------- forward pass ------------------------------ #

def rel_multi_head_attn_forward(w, r, params, attn_mask=None, mems=None,
                                n_head=4, pre_lnorm=False):
    qlen, bsz, d_model = w.shape
    d_head = d_model // n_head
    scale = 1.0 / d_head ** 0.5

    cat = jnp.concatenate([mems, w], axis=0) if mems is not None else w
    klen = cat.shape[0]

    cat_in = cat
    if pre_lnorm:
        cat_in = pallas_layernorm(cat.reshape(-1, d_model),
                                  params["ln_g"], params["ln_b"]
                                  ).reshape(cat.shape)

    # qkv projection: tiled Pallas matmul against the un-transposed torch weight.
    w_heads = pallas_linear(cat_in.reshape(klen * bsz, d_model), params["W_qkv"])
    w_heads = w_heads.reshape(klen, bsz, 3 * d_model)
    q_all = w_heads[-qlen:, :, 0:d_model]             # (qlen, bsz, H*dh)
    k_all = w_heads[:, :, d_model:2 * d_model]        # (klen, bsz, H*dh)
    v_all = w_heads[:, :, 2 * d_model:]               # (klen, bsz, H*dh)

    rlen = r.shape[0]
    assert rlen == klen, "relative embedding length must equal key length"
    r_head_k = pallas_linear(r.reshape(rlen, d_model), params["W_r"])  # (klen, H*dh)

    # batch-major, lane-dense (B, len, H*dh)
    q_b = jnp.transpose(q_all, (1, 0, 2))
    k_b = jnp.transpose(k_all, (1, 0, 2))
    v_b = jnp.transpose(v_all, (1, 0, 2))
    rwb = params["r_w_bias"].reshape(1, n_head * d_head)
    rrb = params["r_r_bias"].reshape(1, n_head * d_head)

    if attn_mask is None:
        mask_bias = jnp.zeros((qlen, klen), jnp.float32)
    else:
        # TODO(synk): only the 2-D attn_mask path is implemented; the 3-D
        # per-batch mask of the original module would need a batch axis here.
        mask_bias = jnp.where(attn_mask.astype(bool), -1e30, 0.0
                              ).astype(jnp.float32)

    # Fused: AC/BD matmuls + in-register rel_shift + mask + softmax + P@V.
    attn_vec = pallas_rel_attention(q_b, k_b, v_b, r_head_k, rwb, rrb,
                                    mask_bias, n_head, scale)   # (B, qlen, H*dh)

    # rows ordered (qlen, bsz) to match the residual `w`
    attn_vec_2d = jnp.transpose(attn_vec, (1, 0, 2)).reshape(
        qlen * bsz, n_head * d_head)

    # Fused: o_net projection + residual + (post) LayerNorm epilogue.
    out_2d = pallas_oproj_residual_ln(
        attn_vec_2d, params["W_o"], w.reshape(qlen * bsz, d_model),
        params["ln_g"], params["ln_b"], post_lnorm=not pre_lnorm)
    # self.drop / self.dropatt: identity at inference
    return out_2d.reshape(qlen, bsz, d_model)


# --------------------------- pure-JAX reference ----------------------------- #

def _reference_forward(w, r, params, attn_mask, mems, n_head, pre_lnorm=False):
    qlen, bsz, d_model = w.shape
    d_head = d_model // n_head
    scale = 1.0 / d_head ** 0.5
    cat = jnp.concatenate([mems, w], axis=0) if mems is not None else w
    klen = cat.shape[0]
    cat_in = cat
    if pre_lnorm:
        mu = cat.mean(-1, keepdims=True)
        var = ((cat - mu) ** 2).mean(-1, keepdims=True)
        cat_in = (cat - mu) / jnp.sqrt(var + 1e-5) * params["ln_g"] + params["ln_b"]
    heads = cat_in @ params["W_qkv"].T
    heads = heads.reshape(klen, bsz, 3, n_head, d_head)
    q = heads[-qlen:, :, 0]
    k = heads[:, :, 1]
    v = heads[:, :, 2]
    rk = (r.reshape(klen, d_model) @ params["W_r"].T).reshape(klen, n_head, d_head)
    AC = jnp.einsum("ibnd,jbnd->ijbn", q + params["r_w_bias"], k)
    BD = jnp.einsum("ibnd,jnd->ijbn", q + params["r_r_bias"], rk)
    zp = jnp.zeros((qlen, 1, bsz, n_head), BD.dtype)
    BDp = jnp.concatenate([zp, BD], axis=1).reshape(klen + 1, qlen, bsz, n_head)
    BD = BDp[1:].reshape(qlen, klen, bsz, n_head)
    score = (AC + BD) * scale
    if attn_mask is not None:
        score = jnp.where(attn_mask[:, :, None, None], -jnp.inf, score)
    prob = jax.nn.softmax(score, axis=1)
    av = jnp.einsum("ijbn,jbnd->ibnd", prob, v).reshape(qlen, bsz, n_head * d_head)
    out = av @ params["W_o"].T
    if pre_lnorm:
        return w + out
    y = w + out
    mu = y.mean(-1, keepdims=True)
    var = ((y - mu) ** 2).mean(-1, keepdims=True)
    return (y - mu) / jnp.sqrt(var + 1e-5) * params["ln_g"] + params["ln_b"]


# --------------------------------- main ------------------------------------ #

if __name__ == "__main__":
    n_head, d_model, bsz, qlen, mlen = 4, 32, 2, 8, 4
    d_head = d_model // n_head
    klen = qlen + mlen
    rlen = klen

    key = jax.random.PRNGKey(0)
    keys = jax.random.split(key, 8)
    params = {
        "W_qkv": 0.02 * jax.random.normal(keys[0], (3 * n_head * d_head, d_model), jnp.float32),
        "W_r":   0.02 * jax.random.normal(keys[1], (n_head * d_head, d_model), jnp.float32),
        "W_o":   0.02 * jax.random.normal(keys[2], (d_model, n_head * d_head), jnp.float32),
        "r_w_bias": 0.02 * jax.random.normal(keys[3], (n_head, d_head), jnp.float32),
        "r_r_bias": 0.02 * jax.random.normal(keys[4], (n_head, d_head), jnp.float32),
        "ln_g": jnp.ones((d_model,), jnp.float32),   # nn.LayerNorm default init
        "ln_b": jnp.zeros((d_model,), jnp.float32),
    }

    w = jax.random.normal(keys[5], (qlen, bsz, d_model), jnp.float32)
    r = jax.random.normal(keys[6], (rlen, 1, d_model), jnp.float32)
    mems = jax.random.normal(keys[7], (mlen, bsz, d_model), jnp.float32)

    # Transformer-XL style causal mask: mask keys strictly in the future.
    row = jnp.arange(qlen)[:, None]
    col = jnp.arange(klen)[None, :]
    attn_mask = col > (row + mlen)          # (qlen, klen) bool, True = masked

    out = rel_multi_head_attn_forward(w, r, params, attn_mask=attn_mask,
                                      mems=mems, n_head=n_head, pre_lnorm=False)
    jax.block_until_ready(out)
    assert out.shape == (qlen, bsz, d_model)
    assert bool(jnp.all(jnp.isfinite(out)))

    ref = _reference_forward(w, r, params, attn_mask, mems, n_head,
                             pre_lnorm=False)
    max_err = float(jnp.max(jnp.abs(out - ref)))
    assert bool(jnp.allclose(out, ref, atol=1e-2, rtol=1e-2)), max_err
    print("KERNEL_OK")
</pallas_src>

<mosaic_0001>
module attributes {stable_mosaic.version = 11 : i64} {
  func.func @_linear_kernel(%arg0: i32, %arg1: i32, %arg2: i32, %arg3: memref<24x32xf32, #tpu.memory_space<vmem>>, %arg4: memref<96x32xf32, #tpu.memory_space<vmem>>, %arg5: memref<24x96xf32, #tpu.memory_space<vmem>>, %arg6: memref<24x96xf32, #tpu.memory_space<vmem>>) attributes {dimension_semantics = [#tpu.dimension_semantics<parallel>, #tpu.dimension_semantics<parallel>, #tpu.dimension_semantics<arbitrary>], iteration_bounds = array<i64: 1, 1, 1>, scalar_prefetch = 0 : i64, scratch_operands = 1 : i64, tpu.core_type = #tpu.core_type<tc>, window_params = [{transform_indices = @transform_0, window_bounds = array<i64: 24, 32>}, {transform_indices = @transform_1, window_bounds = array<i64: 96, 32>}, {transform_indices = @transform_2, window_bounds = array<i64: 24, 96>}]} {
    %c0_i32 = arith.constant 0 : i32
    %0 = arith.cmpi eq, %arg2, %c0_i32 : i32
    %1 = arith.extui %0 : i1 to i32
    %c0_i32_0 = arith.constant 0 : i32
    %2 = arith.cmpi ne, %1, %c0_i32_0 : i32
    scf.if %2 {
      %cst_10 = arith.constant 0.000000e+00 : f32
      %12 = vector.broadcast %cst_10 : f32 to vector<24x96xf32>
      %c0_11 = arith.constant 0 : index
      %c0_12 = arith.constant 0 : index
      %13 = vector.load %arg6[%c0_11, %c0_12] : memref<24x96xf32, #tpu.memory_space<vmem>>, vector<24x96xf32>
      tpu.vector_store %arg6[%c0_11, %c0_12], %12 {strides = array<i32>} : memref<24x96xf32, #tpu.memory_space<vmem>>, vector<24x96xf32>,
    } else {
    }
    %c0 = arith.constant 0 : index
    %c0_1 = arith.constant 0 : index
    %3 = vector.load %arg6[%c0, %c0_1] : memref<24x96xf32, #tpu.memory_space<vmem>>, vector<24x96xf32>
    %c0_2 = arith.constant 0 : index
    %c0_3 = arith.constant 0 : index
    %4 = vector.load %arg3[%c0_2, %c0_3] : memref<24x32xf32, #tpu.memory_space<vmem>>, vector<24x32xf32>
    %c0_4 = arith.constant 0 : index
    %c0_5 = arith.constant 0 : index
    %5 = vector.load %arg4[%c0_4, %c0_5] : memref<96x32xf32, #tpu.memory_space<vmem>>, vector<96x32xf32>
    %cst = arith.constant dense<0.000000e+00> : vector<24x96xf32>
    %6 = tpu.matmul %4, %5, %cst {dimension_numbers = #tpu.dot_dimension_numbers<[1], [1], [0], [0], [0, 0, 1, 0], [], []>} : vector<24x32xf32>, vector<96x32xf32>, vector<24x96xf32> -> vector<24x96xf32>
    %7 = arith.addf %3, %6 : vector<24x96xf32>
    %c0_6 = arith.constant 0 : index
    %c0_7 = arith.constant 0 : index
    %8 = vector.load %arg6[%c0_6, %c0_7] : memref<24x96xf32, #tpu.memory_space<vmem>>, vector<24x96xf32>
    tpu.vector_store %arg6[%c0_6, %c0_7], %7 {strides = array<i32>} : memref<24x96xf32, #tpu.memory_space<vmem>>, vector<24x96xf32>,
    %c0_i32_8 = arith.constant 0 : i32
    %9 = arith.cmpi eq, %arg2, %c0_i32_8 : i32
    %10 = arith.extui %9 : i1 to i32
    %c0_i32_9 = arith.constant 0 : i32
    %11 = arith.cmpi ne, %10, %c0_i32_9 : i32
    scf.if %11 {
      %c0_10 = arith.constant 0 : index
      %c0_11 = arith.constant 0 : index
      %12 = vector.load %arg6[%c0_10, %c0_11] : memref<24x96xf32, #tpu.memory_space<vmem>>, vector<24x96xf32>
      %c0_12 = arith.constant 0 : index
      %c0_13 = arith.constant 0 : index
      %13 = vector.load %arg5[%c0_12, %c0_13] : memref<24x96xf32, #tpu.memory_space<vmem>>, vector<24x96xf32>
      tpu.vector_store %arg5[%c0_12, %c0_13], %12 {strides = array<i32>} : memref<24x96xf32, #tpu.memory_space<vmem>>, vector<24x96xf32>,
    } else {
    }
    return
  }
  func.func @transform_0(%arg0: i32, %arg1: i32, %arg2: i32) -> (i32, i32) {
    %c0_i32 = arith.constant 0 : i32
    return %arg0, %arg2 : i32, i32
  }
  func.func @transform_1(%arg0: i32, %arg1: i32, %arg2: i32) -> (i32, i32) {
    %c0_i32 = arith.constant 0 : i32
    return %arg1, %arg2 : i32, i32
  }
  func.func @transform_2(%arg0: i32, %arg1: i32, %arg2: i32) -> (i32, i32) {
    %c0_i32 = arith.constant 0 : i32
    return %arg0, %arg1 : i32, i32
  }
}

</mosaic_0001>

<bundles_post_ra>
// kernel: tpu_custom_call.1
= control target key start
LH: loop header
LB: loop body
LE: loop exit
PB: predicated region body
PF: predicated region fallthrough
CT: control target
= control target key end

     0   :  { %vm38_vm0 = vcmask 261120   ;;  %v325_v2 = vmov 0.0|0.0   ;;  %vm16_vm2 = vcmask 785408   ;;  %vm326_vm3 = vmmov 0   ;;  %s448_s0 = inlined_call_operand.vmem [shape: f32[24,32], index: 0, kind: input, shape index: {}]   ;;  %s449_s1 = inlined_call_operand.vmem [shape: f32[96,32], index: 1, kind: input, shape index: {}]   ;;  %s450_s2 = inlined_call_operand.hbm [shape: f32[24,96], index: 2, kind: output, shape index: {}]  }
   0x1   :  { %v26_v0 = vld [vmem:[%s449_s1] sm:$0xff]  ;;  %v27_v1 = vld [vmem:[%s449_s1 + $0x8] sm:$0xff]  ;;  %283 = vmatprep.subr.bf16.mxu1 %v325_v2  ;;  %vm354_vm1 = vmpackc.low %vm38_vm0, %vm38_vm0  ;;  %259 = vmatprep.subr.bf16.mxu0 %v325_v2  ;;  %v327_v5 = vmov 0.0  }
   0x2   :  { %v260_v3 = vpack.c.bf16 %v27_v1, %v26_v0  ;;  %253 = vmatprep.mubr.msk.f32.mxu1 %vm326_vm3, %v327_v5  ;;  %250 = vmatprep.mubr.msk.f32.mxu0 %vm326_vm3, %v327_v5  ;;  %18 = vst.msk [vmem:[#allocation2 + $0x8] sm:$0xff] %vm16_vm2, %v327_v5  ;;  %17 = vst.msk [vmem:[#allocation2] sm:$0xff] %vm16_vm2, %v327_v5  ;;  %v28_v6 = vld [vmem:[%s449_s1 + $0x10] sm:$0xff]  ;;  %v29_v7 = vld [vmem:[%s449_s1 + $0x18] sm:$0xff] }
   0x3   :  { %19 = vst.msk [vmem:[#allocation2 + $0x10] sm:$0xff] %vm16_vm2, %v327_v5 }
   0x4   :  { %289 = vmatpush3.bf16.xpose.msk.msra.mxu1 %vm354_vm1, %v260_v3  ;;  %262 = vmatpush3.bf16.xpose.msk.msra.mxu0 %vm354_vm1, %v260_v3 }
   0x5   :  { %284 = vmatprep.subr.bf16.mxu1 %v325_v2  ;;  %263 = vmatprep.subr.bf16.mxu0 %v325_v2 }
   0x6   :  { %7 = vsyncpa [#allocation4], 0  ;;  %v264_v8 = vpack.c.bf16 %v29_v7, %v28_v6  ;;  %v30_v9 = vld [vmem:[%s449_s1 + $0x20] sm:$0xff]  ;;  %v31_v10 = vld [vmem:[%s449_s1 + $0x28] sm:$0xff] }
   0x7   :  { %v268_v11 = vpack.c.bf16 %v31_v10, %v30_v9  ;;  %v32_v12 = vld [vmem:[%s449_s1 + $0x30] sm:$0xff]  ;;  %v33_v13 = vld [vmem:[%s449_s1 + $0x38] sm:$0xff]  ;;  %v34_v15 = vld [vmem:[%s449_s1 + $0x40] sm:$0xff] }
   0x8   :  { %v272_v14 = vpack.c.bf16 %v33_v13, %v32_v12  ;;  %v35_v16 = vld [vmem:[%s449_s1 + $0x48] sm:$0xff]  ;;  %v36_v18 = vld [vmem:[%s449_s1 + $0x50] sm:$0xff]  ;;  %v37_v19 = vld [vmem:[%s449_s1 + $0x58] sm:$0xff] }
   0x9   :  { %v276_v17 = vpack.c.bf16 %v35_v16, %v34_v15  ;;  %v280_v20 = vpack.c.bf16 %v37_v19, %v36_v18  ;;  %v24_v21 = vld [vmem:[%s448_s0 + $0x8] sm:$0xff]  ;;  %v23_v22 = vld [vmem:[%s448_s0] sm:$0xff]  ;;  %v25_v23 = vld [vmem:[%s448_s0 + $0x10] sm:$0xff]  ;;  %s328_s0 = smov [#allocation3]  }
   0xa   :  { %v21_v24 = vld [vmem:[#allocation2 + $0x8] sm:$0xff]  ;;  %v20_v25 = vld [vmem:[#allocation2] sm:$0xff]  ;;  %v22_v32 = vld [vmem:[#allocation2 + $0x10] sm:$0xff]  ;;  %s185_s10 = sshll.u32 %s328_s0, 4  ;;  %s186_s10 = int_to_ptr.vmem [resolvable:$true] %s185_s10 }
   0xb   :  { %s301_s11 = scalar_lea.vmem %s186_s10, 384  ;;  %p306_p1 = scmp.lt.s32.totalorder %s186_s10, %s186_s10 }
   0xc   :  { %290 = vmatpush3.bf16.xpose.msk.msra.mxu1 %vm354_vm1, %v264_v8  ;;  %266 = vmatpush3.bf16.xpose.msk.msra.mxu0 %vm354_vm1, %v264_v8  ;;  %p302_p0 = scmp.ne.s32.totalorder %s186_s10, %s301_s11  ;;  %p307_p2 = scmp.lt.s32.totalorder %s301_s11, %s301_s11 }
   0xd   :  { %285 = vmatprep.subr.bf16.mxu1 %v325_v2  ;;  %267 = vmatprep.subr.bf16.mxu0 %v325_v2 }
   0xe   :  { %p308_p3 = por %p307_p2, %p306_p1 }
  0x10   :  { %p309_p4 = pnand %p308_p3, %p302_p0 }
  0x14   :  { %291 = vmatpush3.bf16.xpose.msk.msra.mxu1 %vm354_vm1, %v268_v11  ;;  %270 = vmatpush3.bf16.xpose.msk.msra.mxu0 %vm354_vm1, %v268_v11 }
  0x15   :  { %286 = vmatprep.subr.bf16.mxu1 %v325_v2  ;;  %271 = vmatprep.subr.bf16.mxu0 %v325_v2 }
  0x1c   :  { %292 = vmatpush3.bf16.xpose.msk.msra.mxu1 %vm354_vm1, %v272_v14  ;;  %274 = vmatpush3.bf16.xpose.msk.msra.mxu0 %vm354_vm1, %v272_v14 }
  0x1d   :  { %287 = vmatprep.subr.bf16.mxu1 %v325_v2  ;;  %275 = vmatprep.subr.bf16.mxu0 %v325_v2 }
  0x24   :  { %293 = vmatpush3.bf16.xpose.msk.msra.mxu1 %vm354_vm1, %v276_v17  ;;  %278 = vmatpush3.bf16.xpose.msk.msra.mxu0 %vm354_vm1, %v276_v17 }
  0x25   :  { %288 = vmatprep.subr.bf16.mxu1 %v325_v2  ;;  %279 = vmatprep.subr.bf16.mxu0 %v325_v2 }
  0x2c   :  { %294 = vmatpush3.bf16.xpose.msk.msra.mxu1 %vm354_vm1, %v280_v20  ;;  %282 = vmatpush3.bf16.xpose.msk.msra.mxu0 %vm354_vm1, %v280_v20 }
  0x33   :  { %254 = vmatmul.mubr.msk.f32.vlgmr.msra.gmra.mrb[0].mxu1 %vm38_vm0, %v24_v21  ;;  %251 = vmatmul.mubr.msk.f32.vlgmr.msra.gmra.mrb[0].mxu0 %vm38_vm0, %v23_v22 }
  0x34   :  { %256 = vmatprep.mubr.msk.f32.mxu1 %vm326_vm3, %v327_v5 }
  0x37   :  { %257 = vmatmul.mubr.msk.f32.gmra.mrb[2].mxu1 %vm38_vm0, %v25_v23 }
 0x106   :  { %v155_v26 = vpop.f32.mrb[0].mxu1  ;;  %v150_v27 = vpop.f32.mrb[0].mxu0 }
 0x107   :  { %v165_v28 = vadd.f32 %v155_v26, %v21_v24  ;;  %v255_v29 = vpop.f32.mrb[1].mxu1  ;;  %v164_v30 = vadd.f32 %v150_v27, %v20_v25  ;;  %v252_v31 = vpop.f32.mrb[1].mxu0 }
 0x109   :  { %169 = vst.msk [vmem:[#allocation2 + $0x8] sm:$0xff] %vm16_vm2, %v165_v28  ;;  %168 = vst.msk [vmem:[#allocation2] sm:$0xff] %vm16_vm2, %v164_v30 }
 0x10a   :  { %v160_v33 = vpop.f32.mrb[2].mxu1 }
 0x10b   :  { %v166_v34 = vadd.f32 %v160_v33, %v22_v32  ;;  %v258_v35 = vpop.f32.mrb[3].mxu1 }
 0x10d   :  { %170 = vst.msk [vmem:[#allocation2 + $0x10] sm:$0xff] %vm16_vm2, %v166_v34 }
 0x110   :  { %v174_v36 = vld [vmem:[#allocation2] sm:$0xff]  ;;  %v175_v37 = vld [vmem:[#allocation2 + $0x8] sm:$0xff] }
 0x111   :  { %177 = vst.msk [vmem:[#allocation3] sm:$0xff] %vm16_vm2, %v174_v36  ;;  %178 = vst.msk [vmem:[#allocation3 + $0x8] sm:$0xff] %vm16_vm2, %v175_v37 }
 0x114   :  { %v176_v38 = vld [vmem:[#allocation2 + $0x10] sm:$0xff] }
 0x115   :  { %179 = vst.msk [vmem:[#allocation3 + $0x10] sm:$0xff] %vm16_vm2, %v176_v38 }
 0x116   :  { %312 = shalt.err (!%p309_p4)
}
 0x117   :  { %s313_s14 = scalar_lea.hbm %s450_s2, 384 }
 0x118   :  { %p314_p5 = scmp.ne.s32.totalorder %s450_s2, %s313_s14  ;;  %p317_p6 = scmp.lt.u32.totalorder %s313_s14, %s450_s2 }
 0x11a   :  { %p319_p7 = pnand %p317_p6, %p314_p5 }
 0x11c   :  { %322 = shalt.err (!%p319_p7)
}
 0x11d   :  { %s329_s19 = smov 128   ;;  %s330_s20 = smov 8  }
 0x11e   :  { %191 = dma.vmem_to_hbm [thread:$0]  %s186_s10, 384, %s450_s2, [#allocation4], %s329_s19, %s329_s19, %s330_s20  }
 0x11f   :  { %323 = dma.done.wait [#allocation4], 384  }
 0x120   :  { %324 = vsyncadd [#allocation4], 4294966912 }
 0x121   :  { %195 = vsyncpa [#allocation4], 1 }

</bundles_post_ra>
